<compile_context>
chip_gen: v6e
topology: v6e:2x2x1
jax: 0.10.0
libtpu: 0.0.40
codegen_flags: <defaults>
</compile_context>

<pallas_src>
import jax
import jax.numpy as jnp
from jax.experimental import pallas as pl
from jax.experimental.pallas import tpu as pltpu


_TILE_BYTES = 4 << 20            # ~4 MiB per input tile (in+out double-buffered ~16-24 MiB)
_VMEM_LIMIT = 48 * 1024 * 1024   # safe on v5e/v6e (128 MiB phys) and v7x (64 MiB phys)


def _scale_kernel(x_ref, s_ref, o_ref):
    # x_ref / o_ref: (TM, TN) tile of the flattened (B*C, D*H*W) array (VMEM)
    # s_ref:         (TM, 1) per-row f32 scale column; broadcasts over lanes on the VPU
    x = x_ref[...].astype(jnp.float32)
    o_ref[...] = (x * s_ref[...]).astype(o_ref.dtype)


def _round_up(v: int, m: int) -> int:
    return -(-v // m) * m


def _round_down(v: int, m: int) -> int:
    return (v // m) * m


def _sublane_align(dtype) -> int:
    # 8 rows for 32-bit dtypes, 16 for 16-bit, 32 for 8-bit (sublane packing).
    return max(8, 32 // jnp.dtype(dtype).itemsize)


def _pick_tiles(R: int, N: int, dtype) -> tuple[int, int]:
    itemsize = jnp.dtype(dtype).itemsize
    align = _sublane_align(dtype)

    # Columns first: prefer TN == N so each tile is one contiguous HBM run.
    if N * align * itemsize <= _TILE_BYTES:
        TN = N                                   # full extent: always a legal block shape
    else:
        TN = _round_down(_TILE_BYTES // (align * itemsize), 128)
        TN = max(128, min(TN, _round_up(N, 128)))

    # Rows: grow TM (multiple of `align`) up to the tile-byte budget.
    max_rows = max(align, _TILE_BYTES // (TN * itemsize))
    if R <= max_rows:
        TM = R                                   # full extent: always legal
    else:
        TM = max(align, _round_down(max_rows, align))

    # v7x: "parallel" grid axes only help if they actually have >= 2 steps.
    # Split a large single-block problem so both TensorCores get work.
    if (pl.cdiv(R, TM) * pl.cdiv(N, TN) < 2
            and R * N * itemsize >= (2 << 20)):
        tm2 = _round_up(pl.cdiv(R, 2), align)
        if tm2 < TM:
            TM = tm2
        else:
            tn2 = _round_up(pl.cdiv(N, 2), 128)
            if tn2 < TN:
                TN = tn2
    return TM, TN


def scale_forward(x: jax.Array, scale: jax.Array) -> jax.Array:
    """x: (B, C, D, H, W); scale: (C,) -> per-channel scaled tensor (promoted dtype)."""
    B, C, D, H, W = x.shape
    assert scale.shape == (C,)

    R = B * C          # row axis: one row per (b, c) slab
    N = D * H * W      # lane-dense column axis

    # PyTorch semantics: scale buffer is float32; output dtype follows promotion.
    out_dtype = jnp.promote_types(x.dtype, jnp.float32)

    # Flattened, lane-dense views (metadata-only reshapes in the wrapper).
    x2 = x.reshape(R, N)
    s_rows = jnp.broadcast_to(
        scale.astype(jnp.float32).reshape(1, C), (B, C)
    ).reshape(R, 1)

    TM, TN = _pick_tiles(R, N, x.dtype)
    grid = (pl.cdiv(R, TM), pl.cdiv(N, TN))     # cdiv grid: padded edge blocks are handled

    out2 = pl.pallas_call(
        _scale_kernel,
        out_shape=jax.ShapeDtypeStruct((R, N), out_dtype),
        grid=grid,
        in_specs=[
            pl.BlockSpec((TM, TN), lambda i, j: (i, j)),   # x tile
            pl.BlockSpec((TM, 1), lambda i, j: (i, 0)),    # per-row scale column (f32)
        ],
        out_specs=pl.BlockSpec((TM, TN), lambda i, j: (i, j)),
        compiler_params=pltpu.CompilerParams(
            dimension_semantics=("parallel", "parallel"),
            vmem_limit_bytes=_VMEM_LIMIT,
        ),
    )(x2, s_rows)

    return out2.reshape(B, C, D, H, W)


if __name__ == "__main__":
    key = jax.random.PRNGKey(0)
    kx, ks = jax.random.split(key)

    # Small shapes consistent with the module: 5-D input, channel axis = 1.
    B, C, D, H, W = 2, 4, 3, 8, 16
    x = jax.random.normal(kx, (B, C, D, H, W), dtype=jnp.float32)
    # Deterministic per-channel scale (the registered float32 buffer in __init__).
    scale = jax.random.uniform(ks, (C,), dtype=jnp.float32, minval=0.5, maxval=1.5)

    out = scale_forward(x, scale)
    out = jax.block_until_ready(out)

    # Reference: x * scale.reshape(1, C, 1, 1, 1)
    ref = x * scale.reshape(1, C, 1, 1, 1)
    assert out.shape == x.shape and out.dtype == ref.dtype
    assert jnp.allclose(out, ref, atol=1e-6, rtol=1e-6)

    print("KERNEL_OK")
</pallas_src>

<mosaic_0001>
module attributes {stable_mosaic.version = 11 : i64} {
  func.func @_scale_kernel(%arg0: i32, %arg1: i32, %arg2: memref<8x384xf32, #tpu.memory_space<vmem>>, %arg3: memref<8x1xf32, #tpu.memory_space<vmem>>, %arg4: memref<8x384xf32, #tpu.memory_space<vmem>>) attributes {dimension_semantics = [#tpu.dimension_semantics<parallel>, #tpu.dimension_semantics<parallel>], iteration_bounds = array<i64: 1, 1>, scalar_prefetch = 0 : i64, scratch_operands = 0 : i64, tpu.core_type = #tpu.core_type<tc>, window_params = [{transform_indices = @transform_0, window_bounds = array<i64: 8, 384>}, {transform_indices = @transform_1, window_bounds = array<i64: 8, 1>}, {transform_indices = @transform_2, window_bounds = array<i64: 8, 384>}]} {
    %c0 = arith.constant 0 : index
    %c0_0 = arith.constant 0 : index
    %0 = vector.load %arg2[%c0, %c0_0] : memref<8x384xf32, #tpu.memory_space<vmem>>, vector<8x384xf32>
    %c0_1 = arith.constant 0 : index
    %c0_2 = arith.constant 0 : index
    %1 = vector.load %arg3[%c0_1, %c0_2] : memref<8x1xf32, #tpu.memory_space<vmem>>, vector<8x1xf32>
    %2 = vector.broadcast %1 : vector<8x1xf32> to vector<8x384xf32>
    %3 = arith.mulf %0, %2 : vector<8x384xf32>
    %c0_3 = arith.constant 0 : index
    %c0_4 = arith.constant 0 : index
    %4 = vector.load %arg4[%c0_3, %c0_4] : memref<8x384xf32, #tpu.memory_space<vmem>>, vector<8x384xf32>
    tpu.vector_store %arg4[%c0_3, %c0_4], %3 {strides = array<i32>} : memref<8x384xf32, #tpu.memory_space<vmem>>, vector<8x384xf32>,
    return
  }
  func.func @transform_0(%arg0: i32, %arg1: i32) -> (i32, i32) {
    %c0_i32 = arith.constant 0 : i32
    return %arg0, %arg1 : i32, i32
  }
  func.func @transform_1(%arg0: i32, %arg1: i32) -> (i32, i32) {
    %c0_i32 = arith.constant 0 : i32
    %c0_i32_0 = arith.constant 0 : i32
    return %arg0, %c0_i32 : i32, i32
  }
  func.func @transform_2(%arg0: i32, %arg1: i32) -> (i32, i32) {
    %c0_i32 = arith.constant 0 : i32
    return %arg0, %arg1 : i32, i32
  }
}

</mosaic_0001>

<bundles_post_ra>
// kernel: tpu_custom_call.1
= control target key start
LH: loop header
LB: loop body
LE: loop exit
PB: predicated region body
PF: predicated region fallthrough
CT: control target
= control target key end

     0   :  { %7 = vsyncpa [#allocation3], 0  ;;  %s129_s0 = inlined_call_operand.hbm [shape: f32[8,384], index: 0, kind: input, shape index: {}]   ;;  %s130_s1 = inlined_call_operand.vmem [shape: f32[8,1], index: 1, kind: input, shape index: {}]   ;;  %s131_s2 = inlined_call_operand.hbm [shape: f32[8,384], index: 2, kind: output, shape index: {}]  }
   0x1   :  { %8 = vsyncpa [#allocation4], 0  ;;  %s102_s9 = smov [#allocation2]  }
   0x2   :  { %s15_s10 = sshll.u32 %s102_s9, 4  ;;  %s16_s10 = int_to_ptr.vmem [resolvable:$true] %s15_s10 }
   0x3   :  { %s66_s11 = scalar_lea.vmem %s16_s10, 384  ;;  %p71_p1 = scmp.lt.s32.totalorder %s16_s10, %s16_s10 }
   0x4   :  { %p67_p0 = scmp.ne.s32.totalorder %s16_s10, %s66_s11  ;;  %p72_p2 = scmp.lt.s32.totalorder %s66_s11, %s66_s11 }
   0x6   :  { %p73_p3 = por %p72_p2, %p71_p1 }
   0x8   :  { %p74_p4 = pnand %p73_p3, %p67_p0 }
   0xa   :  { %77 = shalt.err (!%p74_p4)
}
   0xb   :  { %18 = dma.hbm_to_vmem [thread:$0]  %s129_s0, 384, %s16_s10, [#allocation3]  }
   0xc   :  { %98 = dma.done.wait [#allocation3], 384  }
   0xd   :  { %99 = vsyncadd [#allocation3], 4294966912  ;;  %v103_v0 = vmov 0   ;;  %v27_v1 = vld [vmem:[%s130_s1] sm:$0xff]  ;;  %v25_v3 = vld [vmem:[#allocation2 + $0x8] sm:$0xff]  ;;  %s104_s16 = smov [#allocation5]  }
   0xe   :  { %57 = vset.pattern.permute.xlu0 %v103_v0  ;;  %v24_v2 = vld [vmem:[#allocation2] sm:$0xff]  ;;  %v26_v4 = vld [vmem:[#allocation2 + $0x10] sm:$0xff]  ;;  %s45_s17 = sshll.u32 %s104_s16, 4  ;;  %s46_s17 = int_to_ptr.vmem [resolvable:$true] %s45_s17 }
   0xf   :  { %30 = vperm.xlu0 %57, %v27_v1   ;;  %s78_s0 = scalar_lea.vmem %s46_s17, 384  ;;  %p83_p6 = scmp.lt.s32.totalorder %s46_s17, %s46_s17 }
  0x10   :  { %p79_p5 = scmp.ne.s32.totalorder %s46_s17, %s78_s0  ;;  %p84_p7 = scmp.lt.s32.totalorder %s78_s0, %s78_s0 }
  0x12   :  { %p85_p8 = por %p84_p7, %p83_p6 }
  0x14   :  { %p86_p9 = pnand %p85_p8, %p79_p5 }
  0x8a   :  { %v31_v5 = vpop.permute.xlu0 %30 }
  0x8b   :  { %v33_v6 = vmul.f32 %v31_v5, %v24_v2  ;;  %v34_v7 = vmul.f32 %v31_v5, %v25_v3  ;;  %v35_v8 = vmul.f32 %v31_v5, %v26_v4 }
  0x8d   :  { %36 = vst [vmem:[#allocation5] sm:$0xff] %v33_v6  ;;  %37 = vst [vmem:[#allocation5 + $0x8] sm:$0xff] %v34_v7 }
  0x8e   :  { %38 = vst [vmem:[#allocation5 + $0x10] sm:$0xff] %v35_v8 }
  0x8f   :  { %89 = shalt.err (!%p86_p9)
}
  0x90   :  { %48 = dma.vmem_to_hbm [thread:$0]  %s46_s17, 384, %s131_s2, [#allocation4]  }
  0x91   :  { %100 = dma.done.wait [#allocation4], 384  }
  0x92   :  { %101 = vsyncadd [#allocation4], 4294966912 }
  0x93   :  { %52 = vsyncpa [#allocation3], 1 }
  0x94   :  { %53 = vsyncpa [#allocation4], 1 }

</bundles_post_ra>
